<compile_context>
chip_gen: v7x
topology: tpu7x:2x2x1
jax: 0.10.0
libtpu: 0.0.40
codegen_flags: <defaults>
</compile_context>

<pallas_src>
import functools
import math

import jax
import jax.numpy as jnp
from jax.experimental import pallas as pl
from jax.experimental.pallas import tpu as pltpu

HEAD = 4
DIMS = 64
D_K = DIMS // HEAD  # 16


def selfattn_kernel(xq_ref, kv_ref, wq_ref, bq_ref, wo_ref, bo_ref, o_ref, *,
                    n_valid, matmul_dtype, approx_recip):
    """One (batch element, query-row tile) grid step.

    xq_ref : (tq, 64)      matmul_dtype  query rows for this tile
    kv_ref : (n_pad, 128)  matmul_dtype  fused K|V projection (hoisted, bias in)
    wq_ref : (64, 64)      matmul_dtype  query weight, pre-scaled by 1/sqrt(d_k)
    bq_ref : (1, 64)       f32           query bias, pre-scaled
    wo_ref : (64, 64)      matmul_dtype  output-projection weight
    bo_ref : (1, 64)       f32
    o_ref  : (tq, 64)      f32
    """
    tq = xq_ref.shape[0]
    n_pad = kv_ref.shape[0]

    # Q projection for this tile (matmul_dtype in, f32 accumulate on the MXU).
    q = (jnp.dot(xq_ref[...], wq_ref[...], preferred_element_type=jnp.float32)
         + bq_ref[...])
    q_mm = q.astype(matmul_dtype)
    kv = kv_ref[...]                         # already matmul_dtype, bias included

    # Static mask for zero-padded key rows (built only when padding exists;
    # n_valid is a compile-time constant -> one specialization per N).
    if n_valid < n_pad:
        key_mask = (jax.lax.broadcasted_iota(jnp.int32, (tq, n_pad), 1) < n_valid)
    else:
        key_mask = None

    acc = jnp.zeros((tq, DIMS), jnp.float32)
    for h in range(HEAD):                          # static unroll over 4 heads
        qh = q_mm[:, h * D_K:(h + 1) * D_K]                            # (tq, 16)
        kh = kv[:, h * D_K:(h + 1) * D_K]                              # (n_pad, 16)
        vh = kv[:, DIMS + h * D_K:DIMS + (h + 1) * D_K]                # (n_pad, 16)

        # Transpose folded into MXU dimension numbers (no .T / XLU relayout).
        s = jax.lax.dot_general(qh, kh, (((1,), (1,)), ((), ())),
                                preferred_element_type=jnp.float32)    # (tq, n_pad)
        if key_mask is not None:
            s = jnp.where(key_mask, s, -1e9)

        # Numerically-stable softmax in f32; divide replaced by EUP reciprocal.
        m = jnp.max(s, axis=-1, keepdims=True)
        e = jnp.exp(s - m)
        denom = jnp.sum(e, axis=-1, keepdims=True)
        p = e * pl.reciprocal(denom, approx=approx_recip)
        # TODO(synk): nn.Dropout(p=0.1) on p_attn is identity in eval mode; skipped.

        ctx_h = jnp.dot(p.astype(matmul_dtype), vh,
                        preferred_element_type=jnp.float32)            # (tq, 16)
        # Per-head output-projection accumulate (no lane-axis concat of the
        # four 16-lane context slices); both operands matmul_dtype, f32 acc.
        acc = acc + jnp.dot(ctx_h.astype(matmul_dtype),
                            wo_ref[h * D_K:(h + 1) * D_K, :],
                            preferred_element_type=jnp.float32)

    # 64-lane output store: acceptable at these sizes (per review, the
    # lane-dense reshape would cost an XLU relayout for no measured win here).
    o_ref[...] = acc + bo_ref[...]


def _default_tq():
    # v7x (64 MiB VMEM, 2 TCs): smaller tiles for balanced megacore sharding;
    # v5e/v6e (128 MiB, 1 TC): bigger tiles amortize per-step overhead.
    try:
        vmem = getattr(pltpu.get_tpu_info(), "vmem_capacity_bytes",
                       128 * 1024 * 1024)
    except Exception:
        vmem = 128 * 1024 * 1024
    return 64 if vmem <= 64 * 1024 * 1024 else 256


def _vmem_budget_bytes(n_pad, tq, mm_itemsize):
    dbl = 2                                           # pipeline double-buffering
    x_tile = dbl * tq * DIMS * mm_itemsize
    kv_res = dbl * n_pad * 2 * DIMS * mm_itemsize     # resident fused K|V
    weights = dbl * (2 * DIMS * DIMS * mm_itemsize + 2 * DIMS * 4)
    out_tile = dbl * tq * DIMS * 4
    inter = 4 * tq * n_pad * 4                        # s/e/p f32 temporaries
    total = x_tile + kv_res + weights + out_tile + inter
    # 2x slack for compiler scratch; clamp to [16 MiB, 64 MiB] (v7x-safe cap).
    return int(min(max(2 * total, 16 * 1024 * 1024), 64 * 1024 * 1024))


def self_attn_module(x, wq, bq, wk, bk, wv, bv, wo, bo, *, tq=None,
                     matmul_dtype=jnp.bfloat16, approx_recip=True):
    """SelfAttn_module forward.

    x: (N, 64) or (B, N, 64) f32 (a leading batch axis amortizes launch
    overhead across many small-N problems).  Weights are [in, out]
    (pre-transposed vs torch nn.Linear); biases are (1, 64).
    """
    squeeze_batch = (x.ndim == 2)
    x3 = x[None] if squeeze_batch else x
    B, n, _ = x3.shape
    scale = 1.0 / math.sqrt(D_K)
    mm_itemsize = jnp.dtype(matmul_dtype).itemsize
    row_mult = 8 if mm_itemsize >= 4 else 16          # sublane packing multiple

    if tq is None:
        tq = _default_tq()
    tq = max(row_mult, (tq // row_mult) * row_mult)

    # Pad N up to the query-row tile (small N collapses to a single tile).
    if n <= tq:
        n_pad = -(-n // row_mult) * row_mult
        tq_eff = n_pad
    else:
        n_pad = -(-n // tq) * tq
        tq_eff = tq
    x_p = x3 if n_pad == n else jnp.pad(x3, ((0, 0), (0, n_pad - n), (0, 0)))

    # Fold 1/sqrt(d_k) into the query projection (zero in-kernel cost) and cast
    # every matmul operand to matmul_dtype (bf16 MXU inputs, f32 accumulation).
    wq_s = (wq * scale).astype(matmul_dtype)
    bq_s = (bq * scale).astype(jnp.float32)
    wo_mm = wo.astype(matmul_dtype)
    bo_f = bo.astype(jnp.float32)
    xq_in = x_p.astype(matmul_dtype)

    # Hoisted K/V projection: computed once per sequence in the wrapper (plain
    # XLA matmul) instead of being recomputed inside every query-tile grid
    # step; fed to the kernel as a resident (n_pad, 128) lane-dense block.
    wkv = jnp.concatenate([wk, wv], axis=1)                            # (64, 128)
    bkv = jnp.concatenate([bk, bv], axis=1)                            # (1, 128)
    kv = (jnp.matmul(x_p, wkv) + bkv).astype(matmul_dtype)             # (B, n_pad, 128)

    grid = (B, n_pad // tq_eff)
    kernel = functools.partial(selfattn_kernel, n_valid=n,
                               matmul_dtype=matmul_dtype,
                               approx_recip=approx_recip)
    const2d = lambda shape: pl.BlockSpec(shape, lambda b, i: (0, 0))

    # TODO(synk): for very large N (tens of thousands) stream K/V tiles with an
    # online softmax so VMEM stays O(tq*tk) instead of O(N), and single-buffer
    # the resident kv/weight inputs (pipeline_mode) to halve their footprint.
    out = pl.pallas_call(
        kernel,
        out_shape=jax.ShapeDtypeStruct((B, n_pad, DIMS), jnp.float32),
        grid=grid,
        in_specs=[
            pl.BlockSpec((None, tq_eff, DIMS), lambda b, i: (b, i, 0)),     # x query tile
            pl.BlockSpec((None, n_pad, 2 * DIMS), lambda b, i: (b, 0, 0)),  # kv (resident)
            const2d((DIMS, DIMS)), const2d((1, DIMS)),                      # wq (scaled), bq
            const2d((DIMS, DIMS)), const2d((1, DIMS)),                      # wo, bo
        ],
        out_specs=pl.BlockSpec((None, tq_eff, DIMS), lambda b, i: (b, i, 0)),
        compiler_params=pltpu.CompilerParams(
            # Batch elements and query-row tiles are independent -> megacore.
            dimension_semantics=("parallel", "parallel"),
            vmem_limit_bytes=_vmem_budget_bytes(n_pad, tq_eff, mm_itemsize)),
    )(xq_in, kv, wq_s, bq_s, wo_mm, bo_f)

    out = out[:, :n]
    return out[0] if squeeze_batch else out


def self_attn_reference(x, wq, bq, wk, bk, wv, bv, wo, bo):
    """Pure-JAX reference mirroring the PyTorch forward (eval mode), x: (N, 64)."""
    n = x.shape[0]
    q = x @ wq + bq
    k = x @ wk + bk
    v = x @ wv + bv
    qh = q.reshape(n, HEAD, D_K).transpose(1, 0, 2)
    kh = k.reshape(n, HEAD, D_K).transpose(1, 0, 2)
    vh = v.reshape(n, HEAD, D_K).transpose(1, 0, 2)
    scores = jnp.einsum('hnd,hmd->hnm', qh, kh) / math.sqrt(D_K)
    p = jax.nn.softmax(scores, axis=-1)
    ctx = jnp.einsum('hnm,hmd->hnd', p, vh)                            # (4, N, 16)
    ctx = ctx.transpose(1, 0, 2).reshape(n, HEAD * D_K)                # (N, 64)
    return ctx @ wo + bo


if __name__ == "__main__":
    key = jax.random.PRNGKey(0)
    keys = jax.random.split(key, 9)

    # Deterministic synthetic parameters. Weights are [in, out] (pre-transposed
    # relative to torch's nn.Linear [out, in]); biases are [1, out].
    def mk_linear(kw, kb):
        w = jax.random.normal(kw, (DIMS, DIMS), dtype=jnp.float32) / math.sqrt(DIMS)
        b = jax.random.normal(kb, (1, DIMS), dtype=jnp.float32) * 0.01
        return w, b

    wq, bq = mk_linear(keys[1], keys[2])
    wk, bk = mk_linear(keys[3], keys[4])
    wv, bv = mk_linear(keys[5], keys[6])
    wo, bo = mk_linear(keys[7], keys[8])
    params = (wq, bq, wk, bk, wv, bv, wo, bo)

    # 1) Small N (the module's typical nbatches), f32 matmuls: strict check.
    n_small = 8
    x_small = jax.random.normal(keys[0], (n_small, DIMS), dtype=jnp.float32)
    out_small = jax.block_until_ready(
        self_attn_module(x_small, *params, matmul_dtype=jnp.float32))
    ref_small = self_attn_reference(x_small, *params)
    assert out_small.shape == (n_small, DIMS)
    err = jnp.max(jnp.abs(out_small - ref_small))
    assert jnp.allclose(out_small, ref_small, atol=5e-3, rtol=5e-3), (
        f"max abs err = {err}")

    # 2) Larger, non-tile-multiple N (f32): exercises the query-row grid and
    #    the padded-key mask with the hoisted KV projection.
    n_big = 200
    x_big = jax.random.normal(jax.random.PRNGKey(1), (n_big, DIMS),
                              dtype=jnp.float32)
    out_big = jax.block_until_ready(
        self_attn_module(x_big, *params, tq=128, matmul_dtype=jnp.float32))
    ref_big = self_attn_reference(x_big, *params)
    assert out_big.shape == (n_big, DIMS)
    err = jnp.max(jnp.abs(out_big - ref_big))
    assert jnp.allclose(out_big, ref_big, atol=5e-3, rtol=5e-3), (
        f"max abs err = {err}")

    # 3) Default bf16-MXU-input path, multi-tile: numeric check at a looser
    #    tolerance (not just isfinite) so precision regressions are caught.
    out_bf16 = jax.block_until_ready(self_attn_module(x_big, *params, tq=64))
    assert out_bf16.shape == (n_big, DIMS)
    err = jnp.max(jnp.abs(out_bf16 - ref_big))
    assert jnp.allclose(out_bf16, ref_big, atol=7.5e-2, rtol=7.5e-2), (
        f"bf16 max abs err = {err}")

    # 4) Batched small-N problems share one pallas_call (launch amortization).
    B, n_b = 4, 40
    x_batch = jax.random.normal(jax.random.PRNGKey(2), (B, n_b, DIMS),
                                dtype=jnp.float32)
    out_batch = jax.block_until_ready(self_attn_module(x_batch, *params))
    ref_batch = jax.vmap(lambda xb: self_attn_reference(xb, *params))(x_batch)
    assert out_batch.shape == (B, n_b, DIMS)
    err = jnp.max(jnp.abs(out_batch - ref_batch))
    assert jnp.allclose(out_batch, ref_batch, atol=7.5e-2, rtol=7.5e-2), (
        f"batched bf16 max abs err = {err}")

    print("KERNEL_OK")
</pallas_src>

<mosaic_0001>
module attributes {stable_mosaic.version = 11 : i64} {
  func.func @selfattn_kernel(%arg0: i32, %arg1: i32, %arg2: memref<1x8x64xf32, #tpu.memory_space<vmem>>, %arg3: memref<1x8x128xf32, #tpu.memory_space<vmem>>, %arg4: memref<64x64xf32, #tpu.memory_space<vmem>>, %arg5: memref<1x64xf32, #tpu.memory_space<vmem>>, %arg6: memref<64x64xf32, #tpu.memory_space<vmem>>, %arg7: memref<1x64xf32, #tpu.memory_space<vmem>>, %arg8: memref<1x8x64xf32, #tpu.memory_space<vmem>>) attributes {dimension_semantics = [#tpu.dimension_semantics<parallel>, #tpu.dimension_semantics<parallel>], iteration_bounds = array<i64: 1, 1>, scalar_prefetch = 0 : i64, scratch_operands = 0 : i64, tpu.core_type = #tpu.core_type<tc>, window_params = [{transform_indices = @transform_0, window_bounds = array<i64: 1, 8, 64>}, {transform_indices = @transform_1, window_bounds = array<i64: 1, 8, 128>}, {pipeline_mode = #tpu.pipeline_mode<synchronous>, transform_indices = @transform_2, window_bounds = array<i64: 64, 64>}, {pipeline_mode = #tpu.pipeline_mode<synchronous>, transform_indices = @transform_3, window_bounds = array<i64: 1, 64>}, {pipeline_mode = #tpu.pipeline_mode<synchronous>, transform_indices = @transform_4, window_bounds = array<i64: 64, 64>}, {pipeline_mode = #tpu.pipeline_mode<synchronous>, transform_indices = @transform_5, window_bounds = array<i64: 1, 64>}, {transform_indices = @transform_6, window_bounds = array<i64: 1, 8, 64>}]} {
    %c0 = arith.constant 0 : index
    %c0_0 = arith.constant 0 : index
    %c0_1 = arith.constant 0 : index
    %0 = vector.load %arg2[%c0, %c0_0, %c0_1] : memref<1x8x64xf32, #tpu.memory_space<vmem>>, vector<1x8x64xf32>
    %1 = vector.shape_cast %0 : vector<1x8x64xf32> to vector<8x64xf32>
    %c0_2 = arith.constant 0 : index
    %c0_3 = arith.constant 0 : index
    %2 = vector.load %arg4[%c0_2, %c0_3] : memref<64x64xf32, #tpu.memory_space<vmem>>, vector<64x64xf32>
    %cst = arith.constant dense<0.000000e+00> : vector<8x64xf32>
    %3 = tpu.matmul %1, %2, %cst {dimension_numbers = #tpu.dot_dimension_numbers<[1], [0], [0], [1], [0, 0, 1, 1], [], []>} : vector<8x64xf32>, vector<64x64xf32>, vector<8x64xf32> -> vector<8x64xf32>
    %c0_4 = arith.constant 0 : index
    %c0_5 = arith.constant 0 : index
    %4 = vector.load %arg5[%c0_4, %c0_5] : memref<1x64xf32, #tpu.memory_space<vmem>>, vector<1x64xf32>
    %5 = vector.broadcast %4 : vector<1x64xf32> to vector<8x64xf32>
    %6 = arith.addf %3, %5 : vector<8x64xf32>
    %c0_6 = arith.constant 0 : index
    %c0_7 = arith.constant 0 : index
    %c0_8 = arith.constant 0 : index
    %7 = vector.load %arg3[%c0_6, %c0_7, %c0_8] : memref<1x8x128xf32, #tpu.memory_space<vmem>>, vector<1x8x128xf32>
    %8 = vector.shape_cast %7 : vector<1x8x128xf32> to vector<8x128xf32>
    %cst_9 = arith.constant 0.000000e+00 : f32
    %9 = vector.broadcast %cst_9 : f32 to vector<8x64xf32>
    %10 = vector.extract_strided_slice %6 {offsets = [0, 0], sizes = [8, 16], strides = [1, 1]} : vector<8x64xf32> to vector<8x16xf32>
    %11 = vector.extract_strided_slice %8 {offsets = [0, 0], sizes = [8, 16], strides = [1, 1]} : vector<8x128xf32> to vector<8x16xf32>
    %12 = vector.extract_strided_slice %8 {offsets = [0, 64], sizes = [8, 16], strides = [1, 1]} : vector<8x128xf32> to vector<8x16xf32>
    %cst_10 = arith.constant dense<0.000000e+00> : vector<8x8xf32>
    %13 = tpu.matmul %10, %11, %cst_10 {dimension_numbers = #tpu.dot_dimension_numbers<[1], [1], [0], [0], [0, 0, 1, 0], [], []>} : vector<8x16xf32>, vector<8x16xf32>, vector<8x8xf32> -> vector<8x8xf32>
    %cst_11 = arith.constant dense<0xFF800000> : vector<8xf32>
    %14 = vector.multi_reduction <maximumf>, %13, %cst_11 [1] : vector<8x8xf32> to vector<8xf32>
    %15 = vector.shape_cast %14 : vector<8xf32> to vector<8x1xf32>
    %16 = vector.broadcast %15 : vector<8x1xf32> to vector<8x8xf32>
    %17 = arith.subf %13, %16 : vector<8x8xf32>
    %18 = math.exp %17 : vector<8x8xf32>
    %cst_12 = arith.constant dense<0.000000e+00> : vector<8xf32>
    %19 = vector.multi_reduction <add>, %18, %cst_12 [1] : vector<8x8xf32> to vector<8xf32>
    %20 = vector.shape_cast %19 : vector<8xf32> to vector<8x1xf32>
    %21 = tpu.reciprocal %20 {approx = true} : vector<8x1xf32> -> vector<8x1xf32>
    %22 = vector.broadcast %21 : vector<8x1xf32> to vector<8x8xf32>
    %23 = arith.mulf %18, %22 : vector<8x8xf32>
    %cst_13 = arith.constant dense<0.000000e+00> : vector<8x16xf32>
    %24 = tpu.matmul %23, %12, %cst_13 {dimension_numbers = #tpu.dot_dimension_numbers<[1], [0], [0], [1], [0, 0, 1, 1], [], []>} : vector<8x8xf32>, vector<8x16xf32>, vector<8x16xf32> -> vector<8x16xf32>
    %c0_14 = arith.constant 0 : index
    %c0_15 = arith.constant 0 : index
    %25 = vector.load %arg6[%c0_14, %c0_15] : memref<64x64xf32, #tpu.memory_space<vmem>>, vector<16x64xf32>
    %cst_16 = arith.constant dense<0.000000e+00> : vector<8x64xf32>
    %26 = tpu.matmul %24, %25, %cst_16 {dimension_numbers = #tpu.dot_dimension_numbers<[1], [0], [0], [1], [0, 0, 1, 1], [], []>} : vector<8x16xf32>, vector<16x64xf32>, vector<8x64xf32> -> vector<8x64xf32>
    %27 = arith.addf %9, %26 : vector<8x64xf32>
    %28 = vector.extract_strided_slice %6 {offsets = [0, 16], sizes = [8, 16], strides = [1, 1]} : vector<8x64xf32> to vector<8x16xf32>
    %29 = vector.extract_strided_slice %8 {offsets = [0, 16], sizes = [8, 16], strides = [1, 1]} : vector<8x128xf32> to vector<8x16xf32>
    %30 = vector.extract_strided_slice %8 {offsets = [0, 80], sizes = [8, 16], strides = [1, 1]} : vector<8x128xf32> to vector<8x16xf32>
    %cst_17 = arith.constant dense<0.000000e+00> : vector<8x8xf32>
    %31 = tpu.matmul %28, %29, %cst_17 {dimension_numbers = #tpu.dot_dimension_numbers<[1], [1], [0], [0], [0, 0, 1, 0], [], []>} : vector<8x16xf32>, vector<8x16xf32>, vector<8x8xf32> -> vector<8x8xf32>
    %cst_18 = arith.constant dense<0xFF800000> : vector<8xf32>
    %32 = vector.multi_reduction <maximumf>, %31, %cst_18 [1] : vector<8x8xf32> to vector<8xf32>
    %33 = vector.shape_cast %32 : vector<8xf32> to vector<8x1xf32>
    %34 = vector.broadcast %33 : vector<8x1xf32> to vector<8x8xf32>
    %35 = arith.subf %31, %34 : vector<8x8xf32>
    %36 = math.exp %35 : vector<8x8xf32>
    %cst_19 = arith.constant dense<0.000000e+00> : vector<8xf32>
    %37 = vector.multi_reduction <add>, %36, %cst_19 [1] : vector<8x8xf32> to vector<8xf32>
    %38 = vector.shape_cast %37 : vector<8xf32> to vector<8x1xf32>
    %39 = tpu.reciprocal %38 {approx = true} : vector<8x1xf32> -> vector<8x1xf32>
    %40 = vector.broadcast %39 : vector<8x1xf32> to vector<8x8xf32>
    %41 = arith.mulf %36, %40 : vector<8x8xf32>
    %cst_20 = arith.constant dense<0.000000e+00> : vector<8x16xf32>
    %42 = tpu.matmul %41, %30, %cst_20 {dimension_numbers = #tpu.dot_dimension_numbers<[1], [0], [0], [1], [0, 0, 1, 1], [], []>} : vector<8x8xf32>, vector<8x16xf32>, vector<8x16xf32> -> vector<8x16xf32>
    %c16 = arith.constant 16 : index
    %c0_21 = arith.constant 0 : index
    %43 = vector.load %arg6[%c16, %c0_21] : memref<64x64xf32, #tpu.memory_space<vmem>>, vector<16x64xf32>
    %cst_22 = arith.constant dense<0.000000e+00> : vector<8x64xf32>
    %44 = tpu.matmul %42, %43, %cst_22 {dimension_numbers = #tpu.dot_dimension_numbers<[1], [0], [0], [1], [0, 0, 1, 1], [], []>} : vector<8x16xf32>, vector<16x64xf32>, vector<8x64xf32> -> vector<8x64xf32>
    %45 = arith.addf %27, %44 : vector<8x64xf32>
    %46 = vector.extract_strided_slice %6 {offsets = [0, 32], sizes = [8, 16], strides = [1, 1]} : vector<8x64xf32> to vector<8x16xf32>
    %47 = vector.extract_strided_slice %8 {offsets = [0, 32], sizes = [8, 16], strides = [1, 1]} : vector<8x128xf32> to vector<8x16xf32>
    %48 = vector.extract_strided_slice %8 {offsets = [0, 96], sizes = [8, 16], strides = [1, 1]} : vector<8x128xf32> to vector<8x16xf32>
    %cst_23 = arith.constant dense<0.000000e+00> : vector<8x8xf32>
    %49 = tpu.matmul %46, %47, %cst_23 {dimension_numbers = #tpu.dot_dimension_numbers<[1], [1], [0], [0], [0, 0, 1, 0], [], []>} : vector<8x16xf32>, vector<8x16xf32>, vector<8x8xf32> -> vector<8x8xf32>
    %cst_24 = arith.constant dense<0xFF800000> : vector<8xf32>
    %50 = vector.multi_reduction <maximumf>, %49, %cst_24 [1] : vector<8x8xf32> to vector<8xf32>
    %51 = vector.shape_cast %50 : vector<8xf32> to vector<8x1xf32>
    %52 = vector.broadcast %51 : vector<8x1xf32> to vector<8x8xf32>
    %53 = arith.subf %49, %52 : vector<8x8xf32>
    %54 = math.exp %53 : vector<8x8xf32>
    %cst_25 = arith.constant dense<0.000000e+00> : vector<8xf32>
    %55 = vector.multi_reduction <add>, %54, %cst_25 [1] : vector<8x8xf32> to vector<8xf32>
    %56 = vector.shape_cast %55 : vector<8xf32> to vector<8x1xf32>
    %57 = tpu.reciprocal %56 {approx = true} : vector<8x1xf32> -> vector<8x1xf32>
    %58 = vector.broadcast %57 : vector<8x1xf32> to vector<8x8xf32>
    %59 = arith.mulf %54, %58 : vector<8x8xf32>
    %cst_26 = arith.constant dense<0.000000e+00> : vector<8x16xf32>
    %60 = tpu.matmul %59, %48, %cst_26 {dimension_numbers = #tpu.dot_dimension_numbers<[1], [0], [0], [1], [0, 0, 1, 1], [], []>} : vector<8x8xf32>, vector<8x16xf32>, vector<8x16xf32> -> vector<8x16xf32>
    %c32 = arith.constant 32 : index
    %c0_27 = arith.constant 0 : index
    %61 = vector.load %arg6[%c32, %c0_27] : memref<64x64xf32, #tpu.memory_space<vmem>>, vector<16x64xf32>
    %cst_28 = arith.constant dense<0.000000e+00> : vector<8x64xf32>
    %62 = tpu.matmul %60, %61, %cst_28 {dimension_numbers = #tpu.dot_dimension_numbers<[1], [0], [0], [1], [0, 0, 1, 1], [], []>} : vector<8x16xf32>, vector<16x64xf32>, vector<8x64xf32> -> vector<8x64xf32>
    %63 = arith.addf %45, %62 : vector<8x64xf32>
    %64 = vector.extract_strided_slice %6 {offsets = [0, 48], sizes = [8, 16], strides = [1, 1]} : vector<8x64xf32> to vector<8x16xf32>
    %65 = vector.extract_strided_slice %8 {offsets = [0, 48], sizes = [8, 16], strides = [1, 1]} : vector<8x128xf32> to vector<8x16xf32>
    %66 = vector.extract_strided_slice %8 {offsets = [0, 112], sizes = [8, 16], strides = [1, 1]} : vector<8x128xf32> to vector<8x16xf32>
    %cst_29 = arith.constant dense<0.000000e+00> : vector<8x8xf32>
    %67 = tpu.matmul %64, %65, %cst_29 {dimension_numbers = #tpu.dot_dimension_numbers<[1], [1], [0], [0], [0, 0, 1, 0], [], []>} : vector<8x16xf32>, vector<8x16xf32>, vector<8x8xf32> -> vector<8x8xf32>
    %cst_30 = arith.constant dense<0xFF800000> : vector<8xf32>
    %68 = vector.multi_reduction <maximumf>, %67, %cst_30 [1] : vector<8x8xf32> to vector<8xf32>
    %69 = vector.shape_cast %68 : vector<8xf32> to vector<8x1xf32>
    %70 = vector.broadcast %69 : vector<8x1xf32> to vector<8x8xf32>
    %71 = arith.subf %67, %70 : vector<8x8xf32>
    %72 = math.exp %71 : vector<8x8xf32>
    %cst_31 = arith.constant dense<0.000000e+00> : vector<8xf32>
    %73 = vector.multi_reduction <add>, %72, %cst_31 [1] : vector<8x8xf32> to vector<8xf32>
    %74 = vector.shape_cast %73 : vector<8xf32> to vector<8x1xf32>
    %75 = tpu.reciprocal %74 {approx = true} : vector<8x1xf32> -> vector<8x1xf32>
    %76 = vector.broadcast %75 : vector<8x1xf32> to vector<8x8xf32>
    %77 = arith.mulf %72, %76 : vector<8x8xf32>
    %cst_32 = arith.constant dense<0.000000e+00> : vector<8x16xf32>
    %78 = tpu.matmul %77, %66, %cst_32 {dimension_numbers = #tpu.dot_dimension_numbers<[1], [0], [0], [1], [0, 0, 1, 1], [], []>} : vector<8x8xf32>, vector<8x16xf32>, vector<8x16xf32> -> vector<8x16xf32>
    %c48 = arith.constant 48 : index
    %c0_33 = arith.constant 0 : index
    %79 = vector.load %arg6[%c48, %c0_33] : memref<64x64xf32, #tpu.memory_space<vmem>>, vector<16x64xf32>
    %cst_34 = arith.constant dense<0.000000e+00> : vector<8x64xf32>
    %80 = tpu.matmul %78, %79, %cst_34 {dimension_numbers = #tpu.dot_dimension_numbers<[1], [0], [0], [1], [0, 0, 1, 1], [], []>} : vector<8x16xf32>, vector<16x64xf32>, vector<8x64xf32> -> vector<8x64xf32>
    %81 = arith.addf %63, %80 : vector<8x64xf32>
    %c0_35 = arith.constant 0 : index
    %c0_36 = arith.constant 0 : index
    %82 = vector.load %arg7[%c0_35, %c0_36] : memref<1x64xf32, #tpu.memory_space<vmem>>, vector<1x64xf32>
    %83 = vector.broadcast %82 : vector<1x64xf32> to vector<8x64xf32>
    %84 = arith.addf %81, %83 : vector<8x64xf32>
    %c0_37 = arith.constant 0 : index
    %c0_38 = arith.constant 0 : index
    %c0_39 = arith.constant 0 : index
    %85 = vector.load %arg8[%c0_37, %c0_38, %c0_39] : memref<1x8x64xf32, #tpu.memory_space<vmem>>, vector<1x8x64xf32>
    %86 = vector.shape_cast %85 : vector<1x8x64xf32> to vector<8x64xf32>
    %87 = vector.shape_cast %84 : vector<8x64xf32> to vector<1x8x64xf32>
    tpu.vector_store %arg8[%c0_37, %c0_38, %c0_39], %87 {strides = array<i32>} : memref<1x8x64xf32, #tpu.memory_space<vmem>>, vector<1x8x64xf32>,
    return
  }
  func.func @transform_0(%arg0: i32, %arg1: i32) -> (i32, i32, i32) {
    %c0_i32 = arith.constant 0 : i32
    %c0_i32_0 = arith.constant 0 : i32
    return %arg0, %arg1, %c0_i32 : i32, i32, i32
  }
  func.func @transform_1(%arg0: i32, %arg1: i32) -> (i32, i32, i32) {
    %c0_i32 = arith.constant 0 : i32
    %c0_i32_0 = arith.constant 0 : i32
    %c0_i32_1 = arith.constant 0 : i32
    return %arg0, %c0_i32, %c0_i32_0 : i32, i32, i32
  }
  func.func @transform_2(%arg0: i32, %arg1: i32) -> (i32, i32) {
    %c0_i32 = arith.constant 0 : i32
    %c0_i32_0 = arith.constant 0 : i32
    %c0_i32_1 = arith.constant 0 : i32
    return %c0_i32, %c0_i32_0 : i32, i32
  }
  func.func @transform_3(%arg0: i32, %arg1: i32) -> (i32, i32) {
    %c0_i32 = arith.constant 0 : i32
    %c0_i32_0 = arith.constant 0 : i32
    %c0_i32_1 = arith.constant 0 : i32
    return %c0_i32, %c0_i32_0 : i32, i32
  }
  func.func @transform_4(%arg0: i32, %arg1: i32) -> (i32, i32) {
    %c0_i32 = arith.constant 0 : i32
    %c0_i32_0 = arith.constant 0 : i32
    %c0_i32_1 = arith.constant 0 : i32
    return %c0_i32, %c0_i32_0 : i32, i32
  }
  func.func @transform_5(%arg0: i32, %arg1: i32) -> (i32, i32) {
    %c0_i32 = arith.constant 0 : i32
    %c0_i32_0 = arith.constant 0 : i32
    %c0_i32_1 = arith.constant 0 : i32
    return %c0_i32, %c0_i32_0 : i32, i32
  }
  func.func @transform_6(%arg0: i32, %arg1: i32) -> (i32, i32, i32) {
    %c0_i32 = arith.constant 0 : i32
    %c0_i32_0 = arith.constant 0 : i32
    return %arg0, %arg1, %c0_i32 : i32, i32, i32
  }
}

</mosaic_0001>

<bundles_post_ra>
// kernel: tpu_custom_call.1
= control target key start
LH: loop header
LB: loop body
LE: loop exit
PB: predicated region body
PF: predicated region fallthrough
CT: control target
= control target key end

     0   :  { %11 = vsyncpa [#allocation3], 0  ;;  %s1674_s0 = inlined_call_operand.hbm [shape: f32[1,8,64], index: 0, kind: input, shape index: {}]   ;;  %s1675_s1 = inlined_call_operand.hbm [shape: f32[1,8,128], index: 1, kind: input, shape index: {}]   ;;  %s1676_s2 = inlined_call_operand.hbm [shape: f32[64,64], index: 2, kind: input, shape index: {}]   ;;  %s1677_s3 = inlined_call_operand.vmem [shape: f32[1,64], index: 3, kind: input, shape index: {}]   ;;  %s1678_s4 = inlined_call_operand.hbm [shape: f32[64,64], index: 4, kind: input, shape index: {}]   ;;  %s1679_s5 = inlined_call_operand.vmem [shape: f32[1,64], index: 5, kind: input, shape index: {}]   ;;  %s1680_s6 = inlined_call_operand.hbm [shape: f32[1,8,64], index: 6, kind: output, shape index: {}]  }
   0x1   :  { %12 = vsyncpa [#allocation6], 0 }
   0x2   :  { %13 = vsyncpa [#allocation9], 0 }
   0x3   :  { %14 = vsyncpa [#allocation4], 0  ;;  %s1472_s21 = smov [#allocation5]   ;;  %s1473_s23 = smov [#allocation2]  }
   0x4   :  { %s31_s22 = sshll.u32 %s1472_s21, 4  ;;  %s21_s24 = sshll.u32 %s1473_s23, 4  ;;  %s32_s22 = int_to_ptr.vmem [resolvable:$true] %s31_s22  ;;  %s22_s24 = int_to_ptr.vmem [resolvable:$true] %s21_s24 }
   0x5   :  { %s1354_s27 = scalar_lea.hbm %s1675_s1, 128 }
   0x6   :  { %p1355_p0 = scmp.ne.s32.totalorder %s1675_s1, %s1354_s27  ;;  %p1358_p1 = scmp.lt.u32.totalorder %s1354_s27, %s1675_s1 }
   0x8   :  { %p1360_p2 = pnand %p1358_p1, %p1355_p0 }
   0xa   :  { %1363 = shalt.err (!%p1360_p2)
}
   0xb   :  { %s1364_s8 = scalar_lea.vmem %s32_s22, 128  ;;  %p1369_p4 = scmp.lt.s32.totalorder %s32_s22, %s32_s22 }
   0xc   :  { %p1365_p3 = scmp.ne.s32.totalorder %s32_s22, %s1364_s8  ;;  %p1370_p5 = scmp.lt.s32.totalorder %s1364_s8, %s1364_s8 }
   0xe   :  { %p1371_p6 = por %p1370_p5, %p1369_p4 }
  0x10   :  { %p1372_p7 = pnand %p1371_p6, %p1365_p3 }
  0x12   :  { %1375 = shalt.err (!%p1372_p7)
}
  0x13   :  { %34 = dma.hbm_to_vmem [thread:$0]  %s1675_s1, 128, %s32_s22, [#allocation6]  }
  0x14   :  { %s1376_s13 = scalar_lea.hbm %s1674_s0, 128 }
  0x15   :  { %p1377_p8 = scmp.ne.s32.totalorder %s1674_s0, %s1376_s13  ;;  %p1380_p9 = scmp.lt.u32.totalorder %s1376_s13, %s1674_s0 }
  0x17   :  { %p1382_p10 = pnand %p1380_p9, %p1377_p8 }
  0x19   :  { %1385 = shalt.err (!%p1382_p10)
}
  0x1a   :  { %s1386_s18 = scalar_lea.vmem %s22_s24, 128  ;;  %p1391_p12 = scmp.lt.s32.totalorder %s22_s24, %s22_s24 }
  0x1b   :  { %p1387_p11 = scmp.ne.s32.totalorder %s22_s24, %s1386_s18  ;;  %p1392_p13 = scmp.lt.s32.totalorder %s1386_s18, %s1386_s18 }
  0x1d   :  { %p1393_p0 = por %p1392_p13, %p1391_p12 }
  0x1f   :  { %p1394_p1 = pnand %p1393_p0, %p1387_p11 }
  0x21   :  { %1397 = shalt.err (!%p1394_p1)
}
  0x22   :  { %24 = dma.hbm_to_vmem [thread:$0]  %s1674_s0, 128, %s22_s24, [#allocation3]  }
  0x23   :  { %s1474_s20 = smov [#allocation7]   ;;  %s1398_s25 = scalar_lea.hbm %s1676_s2, 1024 }
  0x24   :  { %s40_s21 = sshll.u32 %s1474_s20, 4  ;;  %p1399_p2 = scmp.ne.s32.totalorder %s1676_s2, %s1398_s25  ;;  %s41_s21 = int_to_ptr.vmem [resolvable:$true] %s40_s21 }
  0x25   :  { %p1402_p3 = scmp.lt.u32.totalorder %s1398_s25, %s1676_s2 }
  0x27   :  { %p1404_p4 = pnand %p1402_p3, %p1399_p2 }
  0x29   :  { %1407 = shalt.err (!%p1404_p4)
}
  0x2a   :  { %s1408_s30 = scalar_lea.vmem %s41_s21, 1024  ;;  %p1413_p6 = scmp.lt.s32.totalorder %s41_s21, %s41_s21 }
  0x2b   :  { %p1409_p5 = scmp.ne.s32.totalorder %s41_s21, %s1408_s30  ;;  %p1414_p7 = scmp.lt.s32.totalorder %s1408_s30, %s1408_s30 }
  0x2d   :  { %p1415_p8 = por %p1414_p7, %p1413_p6 }
  0x2f   :  { %p1416_p9 = pnand %p1415_p8, %p1409_p5 }
  0x31   :  { %1419 = shalt.err (!%p1416_p9)
}
  0x32   :  { %s1475_s0 = smov 128   ;;  %s1476_s24 = smov 8  }
  0x33   :  { %46 = dma.hbm_to_vmem [thread:$0]  %s1676_s2, 1024, %s41_s21, [#allocation6], %s1475_s0, %s1475_s0, %s1476_s24  }
  0x34   :  { %s1477_s9 = smov [#allocation8]   ;;  %s1420_s13 = scalar_lea.hbm %s1678_s4, 1024 }
  0x35   :  { %s54_s10 = sshll.u32 %s1477_s9, 4  ;;  %p1421_p10 = scmp.ne.s32.totalorder %s1678_s4, %s1420_s13  ;;  %s55_s10 = int_to_ptr.vmem [resolvable:$true] %s54_s10 }
  0x36   :  { %p1424_p11 = scmp.lt.u32.totalorder %s1420_s13, %s1678_s4 }
  0x38   :  { %p1426_p12 = pnand %p1424_p11, %p1421_p10 }
  0x3a   :  { %1429 = shalt.err (!%p1426_p12)
}
  0x3b   :  { %s1430_s18 = scalar_lea.vmem %s55_s10, 1024  ;;  %p1435_p0 = scmp.lt.s32.totalorder %s55_s10, %s55_s10 }
  0x3c   :  { %p1431_p13 = scmp.ne.s32.totalorder %s55_s10, %s1430_s18  ;;  %p1436_p1 = scmp.lt.s32.totalorder %s1430_s18, %s1430_s18 }
  0x3e   :  { %p1437_p2 = por %p1436_p1, %p1435_p0 }
  0x40   :  { %p1438_p3 = pnand %p1437_p2, %p1431_p13 }
  0x42   :  { %1441 = shalt.err (!%p1438_p3)
}
  0x43   :  { %60 = dma.hbm_to_vmem [thread:$0]  %s1678_s4, 1024, %s55_s10, [#allocation9], %s1475_s0, %s1475_s0, %s1476_s24  }
  0x44   :  { %1464 = dma.done.wait [#allocation3], 128  }
  0x45   :  { %1465 = vsyncadd [#allocation3], 4294967168 }
  0x46   :  { %1466 = dma.done.wait [#allocation6], 1152  }
  0x47   :  { %1467 = vsyncadd [#allocation6], 4294966144 }
  0x48   :  { %1468 = dma.done.wait [#allocation9], 1024  }
  0x49   :  { %1469 = vsyncadd [#allocation9], 4294966272  ;;  %v1478_v0 = vmov 0.0|0.0   ;;  %vm1479_vm0 = vmmov 0   ;;  %v1480_v1 = vmov 0.0   ;;  %v76_v2 = vld [vmem:[#allocation7] sm:$0xff] }
  0x4a   :  { %1297 = vmatprep.subr.bf16.mxu0 %v1478_v0  ;;  %1226 = vmatprep.mubr.msk.f32.mxu0 %vm1479_vm0, %v1480_v1  ;;  %v77_v3 = vld [vmem:[#allocation7 + $0x8] sm:$0xff]  ;;  %v78_v4 = vld [vmem:[#allocation7 + $0x10] sm:$0xff]  ;;  %v79_v6 = vld [vmem:[#allocation7 + $0x18] sm:$0xff]  ;;  %vm91_vm1 = vcmask 523264   ;;  %vm166_vm2 = vcmask 130048   ;;  %vm243_vm3 = vcmask 64512  }
  0x4b   :  { %1229 = vmatprep.subr.mxu1 %v1480_v1  ;;  %1231 = vmatprep.mubr.msk.f32.mxu1 %vm1479_vm0, %v1480_v1  ;;  %v1298_v5 = vpack.c.bf16 %v77_v3, %v76_v2  ;;  %v1301_v7 = vpack.c.bf16 %v79_v6, %v78_v4  ;;  %v80_v8 = vld [vmem:[#allocation7 + $0x20] sm:$0xff]  ;;  %v81_v9 = vld [vmem:[#allocation7 + $0x28] sm:$0xff]  ;;  %v82_v11 = vld [vmem:[#allocation7 + $0x30] sm:$0xff]  ;;  %s1481_s20 = smov 64   ;;  %s1483_s21 = smov 48  }
  0x4c   :  { %v1304_v10 = vpack.c.bf16 %v81_v9, %v80_v8  ;;  %v83_v12 = vld [vmem:[#allocation7 + $0x38] sm:$0xff]  ;;  %v75_v14 = vld [vmem:[#allocation2] sm:$0xff]  ;;  %s1484_s22 = smov 96   ;;  %v331_v49 = vld [vmem:[#allocation8] sm:$0xff]  ;;  %s1485_s23 = smov 32  }
  0x4d   :  { %1299 = vmatpush3.bf16.msra.mxu0 %v1298_v5  ;;  %v1307_v13 = vpack.c.bf16 %v83_v12, %v82_v11  ;;  %v1585_v15 = vld [vmem:[#allocation5] sm:$0xff]  ;;  %v1154_v16 = vld [vmem:[%s1677_s3] ss:$0 sm:$0xff]  ;;  %s1482_s3 = smov 112   ;;  %v332_v50 = vld [vmem:[#allocation8 + $0x8] sm:$0xff]  ;;  %s1486_s25 = smov 80  }
  0x4e   :  { %1300 = vmatprep.subr.bf16.mxu0 %v1478_v0  ;;  %1230 = vmatpush3.xpose.msk.msra.mxu1 %vm166_vm2, %v1585_v15  ;;  %v498_v45 = vld [vmem:[#allocation8 + $0x10] sm:$0xff]  ;;  %v499_v46 = vld [vmem:[#allocation8 + $0x18] sm:$0xff]  ;;  %v1313_v52 = vpack.c.bf16 %v332_v50, %v331_v49  ;;  %v812_v11 = vld [vmem:[#allocation8 + $0x28] sm:$0xff]  ;;  %s1487_s26 = smov 16   ;;  %s1488_s29 = smov [#allocation10]  }
  0x4f   :  { %1234 = vmatprep.subr.mxu1 %v1480_v1  ;;  %255 = vrot.lane.b32.xlu1 %v1585_v15, %s1481_s20  ;;  %v1310_v47 = vpack.c.bf16 %v499_v46, %v498_v45  ;;  %s1143_s30 = sshll.u32 %s1488_s29, 4  ;;  %s1144_s30 = int_to_ptr.vmem [resolvable:$true] %s1143_s30 }
  0x50   :  { %s1442_s0 = scalar_lea.vmem %s1144_s30, 128  ;;  %p1447_p5 = scmp.lt.s32.totalorder %s1144_s30, %s1144_s30 }
  0x51   :  { %1302 = vmatpush3.bf16.msra.mxu0 %v1301_v7  ;;  %p1443_p4 = scmp.ne.s32.totalorder %s1144_s30, %s1442_s0  ;;  %p1448_p6 = scmp.lt.s32.totalorder %s1442_s0, %s1442_s0 }
  0x52   :  { %1303 = vmatprep.subr.bf16.mxu0 %v1478_v0 }
  0x53   :  { %335 = vrot.lane.b32.xlu1 %v1585_v15, %s1482_s3  ;;  %p1449_p7 = por %p1448_p6, %p1447_p5 }
  0x55   :  { %1305 = vmatpush3.bf16.msra.mxu0 %v1304_v10  ;;  %v811_v10 = vld [vmem:[#allocation8 + $0x20] sm:$0xff]  ;;  %p1450_p8 = pnand %p1449_p7, %p1443_p4 }
  0x56   :  { %1306 = vmatprep.subr.bf16.mxu0 %v1478_v0  ;;  %v1316_v12 = vpack.c.bf16 %v812_v11, %v811_v10 }
  0x59   :  { %1308 = vmatpush3.bf16.msra.mxu0 %v1307_v13 }
  0x5a   :  { %1309 = vmatprep.subr.bf16.mxu0 %v1478_v0 }
  0x5c   :  { %1227 = vmatmul.mubr.msk.f32.vlgmr.msra.gmra.mrb[0].mxu0 %vm91_vm1, %v75_v14 }
  0x5d   :  { %1253 = vmatprep.mubr.msk.f32.mxu0 %vm1479_vm0, %v1480_v1  ;;  %1311 = vmatpush3.bf16.msra.mxu0 %v1310_v47 }
  0x5e   :  { %1263 = vmatprep.subr.mxu0 %v1480_v1 }
  0xc1   :  { %v256_v28 = vpop.permute.xlu1 %255 }
  0xc5   :  { %v336_v32 = vpop.permute.xlu1 %335 }
 0x12f   :  { %v161_v17 = vpop.f32.mrb[0].mxu0 }
 0x130   :  { %v1593_v18 = vadd.f32 %v1154_v16, %v161_v17  ;;  %v1228_v19 = vpop.f32.mrb[1].mxu0 }
 0x132   :  { %1232 = vmatmul.mubr.msk.f32.vlgmr.msra.gmra.mrb[0].mxu1 %vm166_vm2, %v1593_v18 }
 0x133   :  { %1236 = vmatprep.mubr.msk.f32.mxu1 %vm1479_vm0, %v1480_v1  ;;  %1235 = vmatpush3.msra.mxu1 %v256_v28 }
 0x134   :  { %1239 = vmatprep.subr.mxu1 %v1480_v1 }
 0x205   :  { %v239_v20 = vpop.f32.mrb[0].mxu1 }
 0x206   :  { %v1233_v21 = vpop.f32.mrb[1].mxu1  ;;  %v244_v22 = vsel %vm243_vm3, %v239_v20, -inf }
 0x207   :  { %245 = vmax.xlane.f32.xlu0 %v244_v22 }
 0x294   :  { %v246_v23 = vpop.xlane.xlu0 %245 }
 0x295   :  { %v247_v24 = vsub.f32 %v239_v20, %v246_v23 }
 0x297   :  { %v248_v25 = vmul.f32 1.442695, %v247_v24 }
 0x299   :  { %1338 = vpow2.f32 %v248_v25 }
 0x2a3   :  { %v1339_v26 = vpop.eup %1338 }
 0x2a4   :  { %v250_v27 = vsel %vm243_vm3, %v1339_v26, 0.0 }
 0x2a5   :  { %251 = vadd.xlane.f32.xlu0 %v250_v27 }
 0x2bb   :  { %333 = vrot.lane.b32.xlu0 %v1593_v18, %s1482_s3 }
 0x332   :  { %v252_v29 = vpop.xlane.xlu0 %251 }
 0x333   :  { %1340 = vrcp.f32 %v252_v29  ;;  %v1052_v29 = vld [vmem:[#allocation8 + $0x30] sm:$0xff] }
 0x336   :  { %v334_v33 = vpop.permute.xlu0 %333 }
 0x33d   :  { %v1341_v30 = vpop.eup %1340 }
 0x33e   :  { %v254_v31 = vmul.f32 %v1341_v30, %v1339_v26 }
 0x340   :  { %1237 = vmatmul.mubr.msk.f32.vlgmr.msra.gmra.mrb[2].mxu1 %vm243_vm3, %v254_v31 }
 0x341   :  { %1240 = vmatpush3.xpose.msk.msra.mxu1 %vm166_vm2, %v336_v32  ;;  %1241 = vmatprep.mubr.msk.f32.mxu1 %vm1479_vm0, %v1480_v1 }
 0x342   :  { %1244 = vmatprep.subr.mxu1 %v1480_v1 }
 0x344   :  { %1242 = vmatmul.mubr.msk.f32.vlgmr.msra.gmra.mrb[4].mxu1 %vm166_vm2, %v334_v33 }
 0x345   :  { %1246 = vmatprep.mubr.msk.f32.mxu1 %vm1479_vm0, %v1480_v1 }
 0x413   :  { %v327_v34 = vpop.f32.mrb[2].mxu1 }
 0x414   :  { %v1238_v35 = vpop.f32.mrb[3].mxu1 }
 0x417   :  { %v407_v36 = vpop.f32.mrb[4].mxu1 }
 0x418   :  { %v1243_v37 = vpop.f32.mrb[5].mxu1  ;;  %v411_v38 = vsel %vm243_vm3, %v407_v36, -inf }
 0x419   :  { %412 = vmax.xlane.f32.xlu1 %v411_v38 }
 0x42a   :  { %422 = vrot.lane.b32.xlu1 %v1585_v15, %s1483_s21 }
 0x42e   :  { %646 = vrot.lane.b32.xlu1 %v1593_v18, %s1484_s22 }
 0x4a6   :  { %v413_v39 = vpop.xlane.xlu1 %412 }
 0x4a7   :  { %v414_v40 = vsub.f32 %v407_v36, %v413_v39  ;;  %v1172_v39 = vld [vmem:[%s1679_s5] ss:$0 sm:$0xff] }
 0x4a9   :  { %v415_v41 = vmul.f32 1.442695, %v414_v40 }
 0x4aa   :  { %v423_v42 = vpop.permute.xlu1 %422 }
 0x4ab   :  { %1342 = vpow2.f32 %v415_v41  ;;  %1245 = vmatpush3.msra.mxu1 %v423_v42 }
 0x4ac   :  { %1312 = vmatprep.subr.bf16.mxu1 %v1478_v0 }
 0x4ae   :  { %v647_v57 = vpop.permute.xlu1 %646 }
 0x4b5   :  { %v1343_v43 = vpop.eup %1342 }
 0x4b6   :  { %v417_v44 = vsel %vm243_vm3, %v1343_v43, 0.0 }
 0x4b7   :  { %418 = vadd.xlane.f32.xlu0 %v417_v44 }
 0x4cd   :  { %648 = vrot.lane.b32.xlu0 %v1585_v15, %s1484_s22 }
 0x544   :  { %v419_v48 = vpop.xlane.xlu0 %418 }
 0x545   :  { %1344 = vrcp.f32 %v419_v48 }
 0x548   :  { %v649_v54 = vpop.permute.xlu0 %648 }
 0x54f   :  { %v1345_v51 = vpop.eup %1344 }
 0x550   :  { %v421_v53 = vmul.f32 %v1345_v51, %v1343_v43 }
 0x552   :  { %1247 = vmatmul.mubr.msk.f32.vlgmr.msra.gmra.mrb[6].mxu1 %vm243_vm3, %v421_v53 }
 0x553   :  { %1314 = vmatpush3.bf16.msra.mxu1 %v1313_v52  ;;  %1260 = vmatprep.mubr.msk.f32.mxu1 %vm1479_vm0, %v1480_v1 }
 0x554   :  { %1268 = vmatprep.subr.mxu1 %v1480_v1 }
 0x556   :  { %1261 = vmatmul.mubr.msk.f32.vlgmr.msra.gmra.mrb[8].mxu1 %vm166_vm2, %v327_v34 }
 0x557   :  { %1270 = vmatprep.mubr.msk.f32.mxu1 %vm1479_vm0, %v1480_v1 }
 0x625   :  { %v494_v55 = vpop.f32.mrb[6].mxu1 }
 0x626   :  { %v1248_v56 = vpop.f32.mrb[7].mxu1  ;;  %1254 = vmatmul.mubr.msk.f32.vlgmr.msra.gmra.mrb[2].mxu0 %vm166_vm2, %v494_v55 }
 0x627   :  { %1264 = vmatpush3.xpose.msk.msra.mxu0 %vm166_vm2, %v649_v54  ;;  %1265 = vmatprep.mubr.msk.f32.mxu0 %vm1479_vm0, %v1480_v1 }
 0x628   :  { %1315 = vmatprep.subr.bf16.mxu0 %v1478_v0 }
 0x629   :  { %v642_v58 = vpop.f32.mrb[8].mxu1 }
 0x62a   :  { %v1262_v59 = vpop.f32.mrb[9].mxu1  ;;  %1266 = vmatmul.mubr.msk.f32.vlgmr.msra.gmra.mrb[4].mxu0 %vm166_vm2, %v647_v57 }
 0x62b   :  { %1277 = vmatprep.mubr.msk.f32.mxu0 %vm1479_vm0, %v1480_v1  ;;  %1317 = vmatpush3.bf16.msra.mxu0 %v1316_v12 }
 0x62c   :  { %1285 = vmatprep.subr.mxu0 %v1480_v1 }
 0x6f9   :  { %v569_v60 = vpop.f32.mrb[2].mxu0 }
 0x6fa   :  { %v643_v61 = vadd.f32 %v642_v58, %v569_v60  ;;  %v1255_v62 = vpop.f32.mrb[3].mxu0 }
 0x6fd   :  { %v720_v63 = vpop.f32.mrb[4].mxu0 }
 0x6fe   :  { %v1267_v2 = vpop.f32.mrb[5].mxu0  ;;  %v724_v3 = vsel %vm243_vm3, %v720_v63, -inf }
 0x6ff   :  { %725 = vmax.xlane.f32.xlu1 %v724_v3 }
 0x710   :  { %735 = vrot.lane.b32.xlu1 %v1585_v15, %s1485_s23 }
 0x714   :  { %887 = vrot.lane.b32.xlu1 %v1593_v18, %s1486_s25 }
 0x78c   :  { %v726_v4 = vpop.xlane.xlu1 %725 }
 0x78d   :  { %v727_v5 = vsub.f32 %v720_v63, %v726_v4 }
 0x78f   :  { %v728_v6 = vmul.f32 1.442695, %v727_v5 }
 0x790   :  { %v736_v7 = vpop.permute.xlu1 %735 }
 0x791   :  { %1346 = vpow2.f32 %v728_v6  ;;  %1269 = vmatpush3.msra.mxu1 %v736_v7 }
 0x792   :  { %1280 = vmatprep.subr.mxu1 %v1480_v1 }
 0x794   :  { %v888_v18 = vpop.permute.xlu1 %887 }
 0x79b   :  { %v1347_v8 = vpop.eup %1346 }
 0x79c   :  { %v730_v9 = vsel %vm243_vm3, %v1347_v8, 0.0 }
 0x79d   :  { %731 = vadd.xlane.f32.xlu0 %v730_v9 }
 0x7b3   :  { %889 = vrot.lane.b32.xlu0 %v1585_v15, %s1486_s25 }
 0x82a   :  { %v732_v13 = vpop.xlane.xlu0 %731 }
 0x82b   :  { %1348 = vrcp.f32 %v732_v13 }
 0x82e   :  { %v890_v17 = vpop.permute.xlu0 %889 }
 0x835   :  { %v1349_v14 = vpop.eup %1348 }
 0x836   :  { %v734_v16 = vmul.f32 %v1349_v14, %v1347_v8 }
 0x838   :  { %1271 = vmatmul.mubr.msk.f32.vlgmr.msra.gmra.mrb[10].mxu1 %vm243_vm3, %v734_v16 }
 0x839   :  { %1281 = vmatpush3.xpose.msk.msra.mxu1 %vm166_vm2, %v890_v17  ;;  %1282 = vmatprep.mubr.msk.f32.mxu1 %vm1479_vm0, %v1480_v1 }
 0x83a   :  { %1318 = vmatprep.subr.bf16.mxu1 %v1478_v0 }
 0x83c   :  { %1283 = vmatmul.mubr.msk.f32.vlgmr.msra.gmra.mrb[12].mxu1 %vm166_vm2, %v888_v18 }
 0x83d   :  { %1294 = vmatprep.mubr.msk.f32.mxu1 %vm1479_vm0, %v1480_v1 }
 0x90b   :  { %v807_v19 = vpop.f32.mrb[10].mxu1 }
 0x90c   :  { %v1272_v20 = vpop.f32.mrb[11].mxu1  ;;  %1278 = vmatmul.mubr.msk.f32.vlgmr.msra.gmra.mrb[6].mxu0 %vm166_vm2, %v807_v19 }
 0x90d   :  { %1287 = vmatprep.mubr.msk.f32.mxu0 %vm1479_vm0, %v1480_v1  ;;  %v1053_v1 = vld [vmem:[#allocation8 + $0x38] sm:$0xff] }
 0x90e   :  { %v1319_v30 = vpack.c.bf16 %v1053_v1, %v1052_v29 }
 0x90f   :  { %v961_v21 = vpop.f32.mrb[12].mxu1 }
 0x910   :  { %v1284_v22 = vpop.f32.mrb[13].mxu1  ;;  %v965_v23 = vsel %vm243_vm3, %v961_v21, -inf  ;;  %1320 = vmatpush3.bf16.msra.mxu1 %v1319_v30 }
 0x911   :  { %966 = vmax.xlane.f32.xlu1 %v965_v23 }
 0x922   :  { %976 = vrot.lane.b32.xlu1 %v1585_v15, %s1487_s26 }
 0x99e   :  { %v967_v0 = vpop.xlane.xlu1 %966 }
 0x99f   :  { %v968_v24 = vsub.f32 %v961_v21, %v967_v0 }
 0x9a1   :  { %v969_v25 = vmul.f32 1.442695, %v968_v24 }
 0x9a2   :  { %v977_v28 = vpop.permute.xlu1 %976 }
 0x9a3   :  { %1350 = vpow2.f32 %v969_v25  ;;  %1286 = vmatpush3.msra.mxu0 %v977_v28 }
 0x9ad   :  { %v1351_v26 = vpop.eup %1350 }
 0x9ae   :  { %v971_v27 = vsel %vm243_vm3, %v1351_v26, 0.0 }
 0x9af   :  { %972 = vadd.xlane.f32.xlu0 %v971_v27 }
 0x9df   :  { %v882_v31 = vpop.f32.mrb[6].mxu0 }
 0x9e0   :  { %v886_v32 = vadd.f32 %v882_v31, %v643_v61  ;;  %v1279_v33 = vpop.f32.mrb[7].mxu0 }
 0xa3c   :  { %v973_v34 = vpop.xlane.xlu0 %972 }
 0xa3d   :  { %1352 = vrcp.f32 %v973_v34 }
 0xa47   :  { %v1353_v15 = vpop.eup %1352 }
 0xa48   :  { %v975_v35 = vmul.f32 %v1353_v15, %v1351_v26 }
 0xa4a   :  { %1288 = vmatmul.mubr.msk.f32.vlgmr.msra.gmra.mrb[8].mxu0 %vm243_vm3, %v975_v35 }
 0xb1d   :  { %v1048_v36 = vpop.f32.mrb[8].mxu0 }
 0xb1e   :  { %v1289_v37 = vpop.f32.mrb[9].mxu0  ;;  %1295 = vmatmul.mubr.msk.f32.vlgmr.msra.gmra.mrb[14].mxu1 %vm166_vm2, %v1048_v36 }
 0xbf1   :  { %v1123_v38 = vpop.f32.mrb[14].mxu1 }
 0xbf2   :  { %v1127_v40 = vadd.f32 %v1123_v38, %v886_v32  ;;  %v1296_v41 = vpop.f32.mrb[15].mxu1 }
 0xbf4   :  { %v1135_v42 = vadd.f32 %v1172_v39, %v1127_v40 }
 0xbf6   :  { %1136 = vst.msk [vmem:[#allocation10] sm:$0xff] %vm91_vm1, %v1135_v42 }
 0xbf7   :  { %1453 = shalt.err (!%p1450_p8)
}
 0xbf8   :  { %s1454_s8 = scalar_lea.hbm %s1680_s6, 128 }
 0xbf9   :  { %p1455_p9 = scmp.ne.s32.totalorder %s1680_s6, %s1454_s8  ;;  %p1458_p10 = scmp.lt.u32.totalorder %s1454_s8, %s1680_s6 }
 0xbfb   :  { %p1460_p11 = pnand %p1458_p10, %p1455_p9 }
 0xbfd   :  { %1463 = shalt.err (!%p1460_p11)
}
 0xbfe   :  { %1146 = dma.vmem_to_hbm [thread:$0]  %s1144_s30, 128, %s1680_s6, [#allocation4]  }
 0xbff   :  { %1470 = dma.done.wait [#allocation4], 128  }
 0xc00   :  { %1471 = vsyncadd [#allocation4], 4294967168 }
 0xc01   :  { %1150 = vsyncpa [#allocation3], 1 }
 0xc02   :  { %1151 = vsyncpa [#allocation6], 1 }
 0xc03   :  { %1152 = vsyncpa [#allocation9], 1 }
 0xc04   :  { %1153 = vsyncpa [#allocation4], 1 }

</bundles_post_ra>
